<compile_context>
chip_gen: v7x
topology: tpu7x:2x2x1
jax: 0.10.0
libtpu: 0.0.40
codegen_flags: <defaults>
</compile_context>

<pallas_src>
from functools import partial

import jax
import jax.numpy as jnp
from jax.experimental import pallas as pl
from jax.experimental.pallas import tpu as pltpu

_LANE = 128
_ROW_ALIGN = 16                      # bf16 (16,128) sublane packing; fine for f32 too
_MAX_TILE_ROWS = 512                 # ~85% of HBM roofline at 512-class tiles
_VMEM_TILE_BUDGET = 48 * 1024 * 1024  # conservative: leaves headroom on v7x (64 MiB/TC)


def _round_up(v, m):
    return ((v + m - 1) // m) * m


def _cdiv(a, b):
    return (a + b - 1) // b


def _vmem_capacity_bytes():
    try:
        return int(getattr(pltpu.get_tpu_info(), "vmem_capacity_bytes", 64 << 20))
    except Exception:
        return 64 << 20  # conservative fallback (v7x per-TC figure)


def _ffn_kernel(x_ref, w1_ref, b1_ref, w2_ref, b2_ref, o_ref):
    # x_ref:  (TILE_N, IN_PAD)   native dtype or bf16
    # w1_ref: (IN_PAD, HID_PAD)  bf16    b1_ref: (1, HID_PAD) f32
    # w2_ref: (HID_PAD, OUT_PAD) bf16    b2_ref: (1, OUT_PAD) f32
    # o_ref:  (TILE_N, OUT_PAD)  x.dtype
    xb = x_ref[...].astype(jnp.bfloat16)  # no-op if already bf16; VPU cast otherwise
    # linear_1 (bf16 operands, f32 accumulate) + bias in f32
    h = jnp.dot(xb, w1_ref[...], preferred_element_type=jnp.float32)
    h = h + b1_ref[...]
    # dropout_1: identity (eval mode)
    # act: exact (erf) GELU, matching torch.nn.GELU() default, kept in f32.
    # (tanh-approx GELU would move this to the EUP slot but changes numerics.)
    h = 0.5 * h * (1.0 + jax.lax.erf(h * 0.7071067811865476))
    # linear_2 (bf16 operands, f32 accumulate) + bias in f32
    h = h.astype(jnp.bfloat16)
    o = jnp.dot(h, w2_ref[...], preferred_element_type=jnp.float32) + b2_ref[...]
    # dropout_2: identity (eval mode)
    o_ref[...] = o.astype(o_ref.dtype)


def prepare_ffn_params(w1, b1, w2, b2):
    """One-time pad (to 128-lane multiples) + bf16 cast of the parameters.

    Call this ONCE at module init; pass the result to `feed_forward` every step.
    Weights laid out [in, out] for row-major MXU matmuls.
    """
    in_dim, hid_dim = w1.shape
    out_dim = w2.shape[1]
    in_pad = _round_up(in_dim, _LANE)
    hid_pad = _round_up(hid_dim, _LANE)
    out_pad = _round_up(out_dim, _LANE)

    # Zero padding is exact: padded x cols hit zero w1 rows, padded hidden lanes
    # stay 0 through GELU, padded output cols/rows are sliced off after the kernel.
    w1p = jnp.zeros((in_pad, hid_pad), jnp.bfloat16).at[:in_dim, :hid_dim].set(
        w1.astype(jnp.bfloat16))
    b1p = jnp.zeros((1, hid_pad), jnp.float32).at[0, :hid_dim].set(
        b1.astype(jnp.float32))
    w2p = jnp.zeros((hid_pad, out_pad), jnp.bfloat16).at[:hid_dim, :out_dim].set(
        w2.astype(jnp.bfloat16))
    b2p = jnp.zeros((1, out_pad), jnp.float32).at[0, :out_dim].set(
        b2.astype(jnp.float32))
    return {"w1p": w1p, "b1p": b1p, "w2p": w2p, "b2p": b2p,
            "in_dim": in_dim, "out_dim": out_dim}


@partial(jax.jit, static_argnames=("in_dim", "out_dim"))
def _ffn_forward(x, w1p, b1p, w2p, b2p, *, in_dim, out_dim):
    n = x.shape[0]
    assert x.shape[1] == in_dim
    in_pad, hid_pad = w1p.shape
    out_pad = w2p.shape[1]
    out_dtype = x.dtype

    # ---- row tiling: balanced tiles, VMEM-budgeted, >=2 steps when possible ----
    x_needs_pad = (in_dim != in_pad)
    x_bytes = 2 if x_needs_pad else jnp.dtype(x.dtype).itemsize  # padded copy is bf16
    out_bytes = jnp.dtype(out_dtype).itemsize
    fixed_vmem = ((in_pad * hid_pad + hid_pad * out_pad) * 2    # bf16 weights, 1-buffered
                  + (hid_pad + out_pad) * 4)                    # f32 biases
    per_row_vmem = (2 * in_pad * x_bytes        # x tile, double-buffered
                    + 2 * out_pad * out_bytes   # out tile, double-buffered
                    + hid_pad * (4 + 2))        # f32 GELU intermediate + bf16 copy
    if fixed_vmem < _VMEM_TILE_BUDGET:
        budget_rows = max(_ROW_ALIGN, (_VMEM_TILE_BUDGET - fixed_vmem) // per_row_vmem)
    else:
        budget_rows = _ROW_ALIGN  # see TODO(synk) on K-streaming above
    target_rows = max(_ROW_ALIGN,
                      min(_MAX_TILE_ROWS, (budget_rows // _ROW_ALIGN) * _ROW_ALIGN))

    n_tiles = _cdiv(n, target_rows)
    if n_tiles == 1 and n >= 256:
        n_tiles = 2  # let the "parallel" row axis span both v7x TensorCores
    tile_n = _round_up(_cdiv(n, n_tiles), _ROW_ALIGN)
    n_pad = _round_up(n, tile_n)
    grid_rows = n_pad // tile_n

    # ---- x: pass native dtype straight through when already aligned ----
    if x_needs_pad or n != n_pad:
        xp = jnp.zeros((n_pad, in_pad), jnp.bfloat16).at[:n, :in_dim].set(
            x.astype(jnp.bfloat16))
    else:
        xp = x  # native dtype; cast to bf16 inside the kernel

    # ---- VMEM limit derived from the actual footprint ----
    need = fixed_vmem + tile_n * per_row_vmem + (4 << 20)  # + compiler scratch headroom
    cap = _vmem_capacity_bytes()
    vmem_limit = int(min(max(need, 32 << 20), max(32 << 20, cap - (8 << 20))))

    flops = 2 * n_pad * (in_pad * hid_pad + hid_pad * out_pad)
    bytes_accessed = (
        n_pad * in_pad * x_bytes
        + n_pad * out_pad * out_bytes
        + in_pad * hid_pad * 2 + hid_pad * out_pad * 2
        + hid_pad * 4 + out_pad * 4
    )

    resident = dict(pipeline_mode=pl.Buffered(1))  # constant index_map: 1 buffer is enough
    out_padded = pl.pallas_call(
        _ffn_kernel,
        out_shape=jax.ShapeDtypeStruct((n_pad, out_pad), out_dtype),
        grid=(grid_rows,),
        in_specs=[
            pl.BlockSpec((tile_n, in_pad), lambda i: (i, 0)),              # x: row tiles
            pl.BlockSpec((in_pad, hid_pad), lambda i: (0, 0), **resident),  # w1 resident
            pl.BlockSpec((1, hid_pad), lambda i: (0, 0), **resident),       # b1 resident
            pl.BlockSpec((hid_pad, out_pad), lambda i: (0, 0), **resident), # w2 resident
            pl.BlockSpec((1, out_pad), lambda i: (0, 0), **resident),       # b2 resident
        ],
        out_specs=pl.BlockSpec((tile_n, out_pad), lambda i: (i, 0)),
        compiler_params=pltpu.CompilerParams(
            dimension_semantics=("parallel",),     # shard rows across TCs (v7x)
            vmem_limit_bytes=vmem_limit,
        ),
        cost_estimate=pl.CostEstimate(
            flops=flops,
            transcendentals=n_pad * hid_pad,       # erf
            bytes_accessed=bytes_accessed,
        ),
    )(xp, w1p, b1p, w2p, b2p)

    if n != n_pad or out_dim != out_pad:
        out_padded = out_padded[:n, :out_dim]
    return out_padded


def feed_forward(x, params):
    """x: [N, input_dim] -> [N, dim]. Eval-mode forward of FeedForwardModule."""
    return _ffn_forward(x, params["w1p"], params["b1p"], params["w2p"], params["b2p"],
                        in_dim=params["in_dim"], out_dim=params["out_dim"])


def _reference_bf16(x, w1, b1, w2, b2):
    # Same bf16 operand rounding as the kernel, f32 accumulation / elementwise.
    h = jnp.dot(x.astype(jnp.bfloat16), w1.astype(jnp.bfloat16),
                preferred_element_type=jnp.float32) + b1.astype(jnp.float32)
    h = 0.5 * h * (1.0 + jax.lax.erf(h * 0.7071067811865476))
    o = jnp.dot(h.astype(jnp.bfloat16), w2.astype(jnp.bfloat16),
                preferred_element_type=jnp.float32) + b2.astype(jnp.float32)
    return o


def _reference_f32(x, w1, b1, w2, b2):
    h = x @ w1 + b1
    h = 0.5 * h * (1.0 + jax.lax.erf(h / jnp.sqrt(2.0)))
    return h @ w2 + b2


if __name__ == "__main__":
    # Module hyperparameters (small, forward-consistent shapes):
    dim = 32
    hidden_dim_multiplier = 4
    input_dim_multiplier = 1
    input_dim = int(dim * input_dim_multiplier)      # 32
    hidden_dim = int(dim * hidden_dim_multiplier)    # 128

    batch, seq = 2, 8
    n_rows = batch * seq                             # 16 rows of features

    key = jax.random.PRNGKey(0)
    k_x, k_w1, k_b1, k_w2, k_b2 = jax.random.split(key, 5)

    x = jax.random.normal(k_x, (n_rows, input_dim), dtype=jnp.float32)

    # Parameters stored transposed ([in, out]) for row-major MXU matmuls.
    w1 = (jax.random.normal(k_w1, (input_dim, hidden_dim), dtype=jnp.float32)
          * (1.0 / jnp.sqrt(input_dim)))
    b1 = jax.random.uniform(k_b1, (hidden_dim,), dtype=jnp.float32,
                            minval=-0.1, maxval=0.1)
    w2 = (jax.random.normal(k_w2, (hidden_dim, dim), dtype=jnp.float32)
          * (1.0 / jnp.sqrt(hidden_dim)))
    b2 = jax.random.uniform(k_b2, (dim,), dtype=jnp.float32,
                            minval=-0.1, maxval=0.1)

    # One-time parameter preparation (pad + bf16 cast), then the fused forward.
    params = jax.tree_util.tree_map(
        lambda a: jax.block_until_ready(a) if isinstance(a, jax.Array) else a,
        prepare_ffn_params(w1, b1, w2, b2))

    out = feed_forward(x, params)
    out = jax.block_until_ready(out)
    assert out.shape == (n_rows, dim), out.shape
    assert out.dtype == x.dtype, out.dtype

    # Tight check vs. a reference with identical bf16 operand rounding.
    ref_bf16 = _reference_bf16(x, w1, b1, w2, b2).astype(x.dtype)
    err_tight = float(jnp.max(jnp.abs(out.astype(jnp.float32)
                                      - ref_bf16.astype(jnp.float32))))
    assert jnp.allclose(out.astype(jnp.float32), ref_bf16.astype(jnp.float32),
                        atol=1e-3, rtol=1e-3), err_tight

    # Loose check vs. the pure-f32 module math (bf16 operand rounding only).
    ref_f32 = _reference_f32(x, w1, b1, w2, b2)
    err_loose = float(jnp.max(jnp.abs(out.astype(jnp.float32) - ref_f32)))
    assert jnp.allclose(out.astype(jnp.float32), ref_f32,
                        atol=5e-2, rtol=5e-2), err_loose

    print("KERNEL_OK")
</pallas_src>

<mosaic_0001>
module attributes {stable_mosaic.version = 11 : i64} {
  func.func @_ffn_kernel(%arg0: i32, %arg1: memref<16x128xbf16, #tpu.memory_space<vmem>>, %arg2: memref<128x128xbf16, #tpu.memory_space<vmem>>, %arg3: memref<1x128xf32, #tpu.memory_space<vmem>>, %arg4: memref<128x128xbf16, #tpu.memory_space<vmem>>, %arg5: memref<1x128xf32, #tpu.memory_space<vmem>>, %arg6: memref<16x128xf32, #tpu.memory_space<vmem>>) attributes {dimension_semantics = [#tpu.dimension_semantics<parallel>], iteration_bounds = array<i64: 1>, scalar_prefetch = 0 : i64, scratch_operands = 0 : i64, tpu.core_type = #tpu.core_type<tc>, window_params = [{transform_indices = @transform_0, window_bounds = array<i64: 16, 128>}, {pipeline_mode = #tpu.pipeline_mode<synchronous>, transform_indices = @transform_1, window_bounds = array<i64: 128, 128>}, {pipeline_mode = #tpu.pipeline_mode<synchronous>, transform_indices = @transform_2, window_bounds = array<i64: 1, 128>}, {pipeline_mode = #tpu.pipeline_mode<synchronous>, transform_indices = @transform_3, window_bounds = array<i64: 128, 128>}, {pipeline_mode = #tpu.pipeline_mode<synchronous>, transform_indices = @transform_4, window_bounds = array<i64: 1, 128>}, {transform_indices = @transform_5, window_bounds = array<i64: 16, 128>}]} {
    %c0 = arith.constant 0 : index
    %c0_0 = arith.constant 0 : index
    %0 = vector.load %arg1[%c0, %c0_0] : memref<16x128xbf16, #tpu.memory_space<vmem>>, vector<16x128xbf16>
    %c0_1 = arith.constant 0 : index
    %c0_2 = arith.constant 0 : index
    %1 = vector.load %arg2[%c0_1, %c0_2] : memref<128x128xbf16, #tpu.memory_space<vmem>>, vector<128x128xbf16>
    %cst = arith.constant dense<0.000000e+00> : vector<16x128xf32>
    %2 = tpu.matmul %0, %1, %cst {dimension_numbers = #tpu.dot_dimension_numbers<[1], [0], [0], [1], [0, 0, 1, 1], [], []>} : vector<16x128xbf16>, vector<128x128xbf16>, vector<16x128xf32> -> vector<16x128xf32>
    %c0_3 = arith.constant 0 : index
    %c0_4 = arith.constant 0 : index
    %3 = vector.load %arg3[%c0_3, %c0_4] : memref<1x128xf32, #tpu.memory_space<vmem>>, vector<1x128xf32>
    %4 = vector.broadcast %3 : vector<1x128xf32> to vector<16x128xf32>
    %5 = arith.addf %2, %4 : vector<16x128xf32>
    %cst_5 = arith.constant 5.000000e-01 : f32
    %6 = vector.broadcast %cst_5 : f32 to vector<16x128xf32>
    %7 = arith.mulf %6, %5 : vector<16x128xf32>
    %cst_6 = arith.constant 0.707106769 : f32
    %8 = vector.broadcast %cst_6 : f32 to vector<16x128xf32>
    %9 = arith.mulf %5, %8 : vector<16x128xf32>
    %10 = math.erf %9 : vector<16x128xf32>
    %cst_7 = arith.constant 1.000000e+00 : f32
    %11 = vector.broadcast %cst_7 : f32 to vector<16x128xf32>
    %12 = arith.addf %11, %10 : vector<16x128xf32>
    %13 = arith.mulf %7, %12 : vector<16x128xf32>
    %14 = arith.truncf %13 : vector<16x128xf32> to vector<16x128xbf16>
    %c0_8 = arith.constant 0 : index
    %c0_9 = arith.constant 0 : index
    %15 = vector.load %arg4[%c0_8, %c0_9] : memref<128x128xbf16, #tpu.memory_space<vmem>>, vector<128x128xbf16>
    %cst_10 = arith.constant dense<0.000000e+00> : vector<16x128xf32>
    %16 = tpu.matmul %14, %15, %cst_10 {dimension_numbers = #tpu.dot_dimension_numbers<[1], [0], [0], [1], [0, 0, 1, 1], [], []>} : vector<16x128xbf16>, vector<128x128xbf16>, vector<16x128xf32> -> vector<16x128xf32>
    %c0_11 = arith.constant 0 : index
    %c0_12 = arith.constant 0 : index
    %17 = vector.load %arg5[%c0_11, %c0_12] : memref<1x128xf32, #tpu.memory_space<vmem>>, vector<1x128xf32>
    %18 = vector.broadcast %17 : vector<1x128xf32> to vector<16x128xf32>
    %19 = arith.addf %16, %18 : vector<16x128xf32>
    %c0_13 = arith.constant 0 : index
    %c0_14 = arith.constant 0 : index
    %20 = vector.load %arg6[%c0_13, %c0_14] : memref<16x128xf32, #tpu.memory_space<vmem>>, vector<16x128xf32>
    tpu.vector_store %arg6[%c0_13, %c0_14], %19 {strides = array<i32>} : memref<16x128xf32, #tpu.memory_space<vmem>>, vector<16x128xf32>,
    return
  }
  func.func @transform_0(%arg0: i32) -> (i32, i32) {
    %c0_i32 = arith.constant 0 : i32
    %c0_i32_0 = arith.constant 0 : i32
    return %arg0, %c0_i32 : i32, i32
  }
  func.func @transform_1(%arg0: i32) -> (i32, i32) {
    %c0_i32 = arith.constant 0 : i32
    %c0_i32_0 = arith.constant 0 : i32
    %c0_i32_1 = arith.constant 0 : i32
    return %c0_i32, %c0_i32_0 : i32, i32
  }
  func.func @transform_2(%arg0: i32) -> (i32, i32) {
    %c0_i32 = arith.constant 0 : i32
    %c0_i32_0 = arith.constant 0 : i32
    %c0_i32_1 = arith.constant 0 : i32
    return %c0_i32, %c0_i32_0 : i32, i32
  }
  func.func @transform_3(%arg0: i32) -> (i32, i32) {
    %c0_i32 = arith.constant 0 : i32
    %c0_i32_0 = arith.constant 0 : i32
    %c0_i32_1 = arith.constant 0 : i32
    return %c0_i32, %c0_i32_0 : i32, i32
  }
  func.func @transform_4(%arg0: i32) -> (i32, i32) {
    %c0_i32 = arith.constant 0 : i32
    %c0_i32_0 = arith.constant 0 : i32
    %c0_i32_1 = arith.constant 0 : i32
    return %c0_i32, %c0_i32_0 : i32, i32
  }
  func.func @transform_5(%arg0: i32) -> (i32, i32) {
    %c0_i32 = arith.constant 0 : i32
    %c0_i32_0 = arith.constant 0 : i32
    return %arg0, %c0_i32 : i32, i32
  }
}

</mosaic_0001>

<bundles_post_ra>
// kernel: _ffn_forward.1
= control target key start
LH: loop header
LB: loop body
LE: loop exit
PB: predicated region body
PF: predicated region fallthrough
CT: control target
= control target key end

     0   :  { %10 = vsyncpa [#allocation3], 0  ;;  %s576_s0 = inlined_call_operand.vmem [shape: bf16[16,128], index: 0, kind: input, shape index: {}]   ;;  %s577_s1 = inlined_call_operand.hbm [shape: bf16[128,128], index: 1, kind: input, shape index: {}]   ;;  %s578_s2 = inlined_call_operand.vmem [shape: f32[1,128], index: 2, kind: input, shape index: {}]   ;;  %s579_s3 = inlined_call_operand.hbm [shape: bf16[128,128], index: 3, kind: input, shape index: {}]   ;;  %s580_s4 = inlined_call_operand.vmem [shape: f32[1,128], index: 4, kind: input, shape index: {}]   ;;  %s581_s5 = inlined_call_operand.hbm [shape: f32[16,128], index: 5, kind: output, shape index: {}]  }
   0x1   :  { %11 = vsyncpa [#allocation6], 0 }
   0x2   :  { %12 = vsyncpa [#allocation4], 0  ;;  %s492_s18 = smov [#allocation2]   ;;  %s420_s22 = scalar_lea.hbm %s577_s1, 1024 }
   0x3   :  { %s20_s19 = sshll.u32 %s492_s18, 4  ;;  %p421_p0 = scmp.ne.s32.totalorder %s577_s1, %s420_s22  ;;  %s21_s19 = int_to_ptr.vmem [resolvable:$true] %s20_s19 }
   0x4   :  { %p424_p1 = scmp.lt.u32.totalorder %s420_s22, %s577_s1 }
   0x6   :  { %p426_p2 = pnand %p424_p1, %p421_p0 }
   0x8   :  { %429 = shalt.err (!%p426_p2)
}
   0x9   :  { %s430_s27 = scalar_lea.vmem %s21_s19, 1024  ;;  %p435_p4 = scmp.lt.s32.totalorder %s21_s19, %s21_s19 }
   0xa   :  { %p431_p3 = scmp.ne.s32.totalorder %s21_s19, %s430_s27  ;;  %p436_p5 = scmp.lt.s32.totalorder %s430_s27, %s430_s27 }
   0xc   :  { %p437_p6 = por %p436_p5, %p435_p4 }
   0xe   :  { %p438_p7 = pnand %p437_p6, %p431_p3 }
  0x10   :  { %441 = shalt.err (!%p438_p7)
}
  0x11   :  { %s493_s28 = smov 64   ;;  %s494_s29 = smov 4  }
  0x12   :  { %26 = dma.hbm_to_vmem [thread:$0]  %s577_s1, 1024, %s21_s19, [#allocation3], %s493_s28, %s493_s28, %s494_s29  }
  0x13   :  { %s495_s7 = smov [#allocation5]   ;;  %s442_s11 = scalar_lea.hbm %s579_s3, 1024 }
  0x14   :  { %s34_s8 = sshll.u32 %s495_s7, 4  ;;  %p443_p8 = scmp.ne.s32.totalorder %s579_s3, %s442_s11  ;;  %s35_s8 = int_to_ptr.vmem [resolvable:$true] %s34_s8 }
  0x15   :  { %p446_p9 = scmp.lt.u32.totalorder %s442_s11, %s579_s3 }
  0x17   :  { %p448_p10 = pnand %p446_p9, %p443_p8 }
  0x19   :  { %451 = shalt.err (!%p448_p10)
}
  0x1a   :  { %s452_s16 = scalar_lea.vmem %s35_s8, 1024  ;;  %p457_p12 = scmp.lt.s32.totalorder %s35_s8, %s35_s8 }
  0x1b   :  { %p453_p11 = scmp.ne.s32.totalorder %s35_s8, %s452_s16  ;;  %p458_p13 = scmp.lt.s32.totalorder %s452_s16, %s452_s16 }
  0x1d   :  { %p459_p0 = por %p458_p13, %p457_p12 }
  0x1f   :  { %p460_p1 = pnand %p459_p0, %p453_p11 }
  0x21   :  { %463 = shalt.err (!%p460_p1)
}
  0x22   :  { %40 = dma.hbm_to_vmem [thread:$0]  %s579_s3, 1024, %s35_s8, [#allocation6], %s493_s28, %s493_s28, %s494_s29  }
  0x23   :  { %486 = dma.done.wait [#allocation3], 1024  }
  0x24   :  { %487 = vsyncadd [#allocation3], 4294966272 }
  0x25   :  { %488 = dma.done.wait [#allocation6], 1024  }
  0x26   :  { %489 = vsyncadd [#allocation6], 4294966272  ;;  %v496_v0 = vmov 0.0   ;;  %vm497_vm0 = vmmov 0   ;;  %v399_v1 = vld [vmem:[#allocation2] sm:$0xff]   ;;  %v400_v2 = vld [vmem:[#allocation2 + $0x8] sm:$0xff]  }
  0x27   :  { %350 = vmatprep.subr.bf16.mxu0 %v496_v0  ;;  %366 = vmatprep.mubr.msk.bf16.mxu0 %vm497_vm0, %v496_v0  ;;  %v401_v3 = vld [vmem:[#allocation2 + $0x10] sm:$0xff]   ;;  %v408_v4 = vld [vmem:[#allocation5] sm:$0xff]   ;;  %v402_v5 = vld [vmem:[#allocation2 + $0x18] sm:$0xff]   ;;  %s498_s21 = smov [#allocation7]  }
  0x28   :  { %370 = vmatprep.subr.bf16.mxu1 %v496_v0  ;;  %386 = vmatprep.mubr.msk.bf16.mxu1 %vm497_vm0, %v496_v0  ;;  %v409_v6 = vld [vmem:[#allocation5 + $0x8] sm:$0xff]   ;;  %v403_v7 = vld [vmem:[#allocation2 + $0x20] sm:$0xff]   ;;  %v405_v9 = vld [vmem:[#allocation2 + $0x30] sm:$0xff]   ;;  %s300_s22 = sshll.u32 %s498_s21, 4  ;;  %s301_s22 = int_to_ptr.vmem [resolvable:$true] %s300_s22 }
  0x29   :  { %351 = vmatpush3.bf16.msra.mxu0 %v399_v1  ;;  %371 = vmatpush3.bf16.msra.mxu1 %v408_v4  ;;  %v404_v8 = vld [vmem:[#allocation2 + $0x28] sm:$0xff]   ;;  %v406_v10 = vld [vmem:[#allocation2 + $0x38] sm:$0xff]   ;;  %v407_v11 = vld [vmem:[%s576_s0] sm:$0xff]   ;;  %s464_s23 = scalar_lea.vmem %s301_s22, 256  ;;  %p469_p3 = scmp.lt.s32.totalorder %s301_s22, %s301_s22 }
  0x2a   :  { %352 = vmatprep.subr.bf16.mxu0 %v496_v0  ;;  %372 = vmatprep.subr.bf16.mxu1 %v496_v0  ;;  %v410_v12 = vld [vmem:[#allocation5 + $0x10] sm:$0xff]   ;;  %v411_v13 = vld [vmem:[#allocation5 + $0x18] sm:$0xff]   ;;  %v412_v14 = vld [vmem:[#allocation5 + $0x20] sm:$0xff]   ;;  %p465_p2 = scmp.ne.s32.totalorder %s301_s22, %s464_s23  ;;  %p470_p4 = scmp.lt.s32.totalorder %s464_s23, %s464_s23 }
  0x2b   :  { %v413_v15 = vld [vmem:[#allocation5 + $0x28] sm:$0xff]   ;;  %v414_v16 = vld [vmem:[#allocation5 + $0x30] sm:$0xff]   ;;  %v415_v17 = vld [vmem:[#allocation5 + $0x38] sm:$0xff]  }
  0x2c   :  { %v313_v18 = vld [vmem:[%s578_s2] ss:$0 sm:$0xff]  ;;  %p471_p5 = por %p470_p4, %p469_p3 }
  0x2d   :  { %353 = vmatpush3.bf16.msra.mxu0 %v400_v2  ;;  %373 = vmatpush3.bf16.msra.mxu1 %v409_v6  ;;  %v323_v36 = vld [vmem:[%s580_s4] ss:$0 sm:$0xff] }
  0x2e   :  { %354 = vmatprep.subr.bf16.mxu0 %v496_v0  ;;  %374 = vmatprep.subr.bf16.mxu1 %v496_v0  ;;  %p472_p6 = pnand %p471_p5, %p465_p2 }
  0x31   :  { %355 = vmatpush3.bf16.msra.mxu0 %v401_v3  ;;  %375 = vmatpush3.bf16.msra.mxu1 %v410_v12 }
  0x32   :  { %356 = vmatprep.subr.bf16.mxu0 %v496_v0  ;;  %376 = vmatprep.subr.bf16.mxu1 %v496_v0 }
  0x35   :  { %357 = vmatpush3.bf16.msra.mxu0 %v402_v5  ;;  %377 = vmatpush3.bf16.msra.mxu1 %v411_v13 }
  0x36   :  { %358 = vmatprep.subr.bf16.mxu0 %v496_v0  ;;  %378 = vmatprep.subr.bf16.mxu1 %v496_v0 }
  0x39   :  { %359 = vmatpush3.bf16.msra.mxu0 %v403_v7  ;;  %379 = vmatpush3.bf16.msra.mxu1 %v412_v14 }
  0x3a   :  { %360 = vmatprep.subr.bf16.mxu0 %v496_v0  ;;  %380 = vmatprep.subr.bf16.mxu1 %v496_v0 }
  0x3d   :  { %361 = vmatpush3.bf16.msra.mxu0 %v404_v8  ;;  %381 = vmatpush3.bf16.msra.mxu1 %v413_v15 }
  0x3e   :  { %362 = vmatprep.subr.bf16.mxu0 %v496_v0  ;;  %382 = vmatprep.subr.bf16.mxu1 %v496_v0 }
  0x41   :  { %363 = vmatpush3.bf16.msra.mxu0 %v405_v9  ;;  %383 = vmatpush3.bf16.msra.mxu1 %v414_v16 }
  0x42   :  { %364 = vmatprep.subr.bf16.mxu0 %v496_v0  ;;  %384 = vmatprep.subr.bf16.mxu1 %v496_v0 }
  0x45   :  { %365 = vmatpush3.bf16.msra.mxu0 %v406_v10  ;;  %385 = vmatpush3.bf16.msra.mxu1 %v415_v17 }
  0x48   :  { %367 = vmatmul.mubr.bf16.vlgmr.msra.gmra.mrb[0].mxu0 %v407_v11 }
 0x11b   :  { %v163_v19 = vpop.f32.mrb[0].mxu0 }
 0x11c   :  { %v164_v20 = vadd.f32 %v313_v18, %v163_v19  ;;  %v368_v21 = vpop.f32.mrb[1].mxu0 }
 0x11d   :  { %v166_v22 = vpop.f32.mrb[2].mxu0 }
 0x11e   :  { %v172_v23 = vmul.f32 0.70710677, %v164_v20  ;;  %v167_v24 = vadd.f32 %v313_v18, %v166_v22  ;;  %v369_v25 = vpop.f32.mrb[3].mxu0  ;;  %v170_v30 = vmul.f32 0.5, %v164_v20 }
 0x120   :  { %416 = verf.f32 %v172_v23  ;;  %v173_v26 = vmul.f32 0.70710677, %v167_v24  ;;  %v171_v31 = vmul.f32 0.5, %v167_v24 }
 0x122   :  { %418 = verf.f32 %v173_v26 }
 0x12a   :  { %v417_v27 = vpop.eup %416 }
 0x12b   :  { %v176_v28 = vadd.f32 1.0, %v417_v27 }
 0x12c   :  { %v419_v29 = vpop.eup %418 }
 0x12d   :  { %v177_v32 = vadd.f32 1.0, %v419_v29  ;;  %v178_v33 = vmul.f32 %v176_v28, %v170_v30 }
 0x12f   :  { %v179_v34 = vmul.f32 %v177_v32, %v171_v31 }
 0x131   :  { %v180_v35 = vpack.c.bf16 %v179_v34, %v178_v33 }
 0x133   :  { %387 = vmatmul.mubr.bf16.vlgmr.msra.gmra.mrb[0].mxu1 %v180_v35 }
 0x206   :  { %v286_v37 = vpop.f32.mrb[0].mxu1 }
 0x207   :  { %v287_v38 = vadd.f32 %v323_v36, %v286_v37  ;;  %v388_v39 = vpop.f32.mrb[1].mxu1 }
 0x208   :  { %v289_v40 = vpop.f32.mrb[2].mxu1 }
 0x209   :  { %293 = vst [vmem:[#allocation7] sm:$0xff] %v287_v38  ;;  %v290_v41 = vadd.f32 %v323_v36, %v289_v40  ;;  %v389_v42 = vpop.f32.mrb[3].mxu1 }
 0x20b   :  { %294 = vst [vmem:[#allocation7 + $0x8] sm:$0xff] %v290_v41 }
 0x20c   :  { %475 = shalt.err (!%p472_p6)
}
 0x20d   :  { %s476_s25 = scalar_lea.hbm %s581_s5, 256 }
 0x20e   :  { %p477_p7 = scmp.ne.s32.totalorder %s581_s5, %s476_s25  ;;  %p480_p8 = scmp.lt.u32.totalorder %s476_s25, %s581_s5 }
 0x210   :  { %p482_p9 = pnand %p480_p8, %p477_p7 }
 0x212   :  { %485 = shalt.err (!%p482_p9)
}
 0x213   :  { %s499_s30 = smov 128   ;;  %s500_s6 = smov 8  }
 0x214   :  { %306 = dma.vmem_to_hbm [thread:$0]  %s301_s22, 256, %s581_s5, [#allocation4], %s499_s30, %s499_s30, %s500_s6  }
 0x215   :  { %490 = dma.done.wait [#allocation4], 256  }
 0x216   :  { %491 = vsyncadd [#allocation4], 4294967040 }
 0x217   :  { %310 = vsyncpa [#allocation3], 1 }
 0x218   :  { %311 = vsyncpa [#allocation6], 1 }
 0x219   :  { %312 = vsyncpa [#allocation4], 1 }

</bundles_post_ra>
